<compile_context>
chip_gen: v5e
topology: v5e:2x2
jax: 0.10.0
libtpu: 0.0.40
codegen_flags: <defaults>
</compile_context>

<pallas_src>
import numpy as np
import jax
import jax.numpy as jnp
from jax import lax
from jax.experimental import pallas as pl
from jax.experimental.pallas import tpu as pltpu

L2_REG = 0.02
TAO = 1.0
EPS = 1e-12            # F.normalize default eps
_NEG_BIG = -1.0e30     # column-mask value; exp() underflows to 0, stays finite

# Tables up to this many bytes are auto-DMA'd whole into VMEM (one copy) and the
# row gather is done on-chip.  Beyond it, fall back to per-row HBM DMA gather.
_SMALL_TABLE_BYTES = 4 * 1024 * 1024
# Per-row DMA issue/wait loops are Python-unrolled up to this many pairs; beyond
# that they are rolled with pl.loop (DMA issue rate is 1/cycle either way).
_MAX_UNROLLED_DMA = 32


def _pair_loss_tail(a_n, p_n, l2_rows, o_shape, *, n, n_pad, inv_tao, inv_n,
                    l2_reg):
    """Loss from normalized anchors/positives (n_pad, D) + per-row L2 (n_pad, 1)."""
    # Similarity matrix on the MXU: S[i, j] = a_i . p_j.  Contract dim 1 of both
    # operands directly (no explicit p_n.T relayout).
    # NOTE(scaling): at MXU-relevant sizes feed bf16 operands (v6e/v7x) with
    # f32 accumulation and 256-aligned M/N tiles; at n_pad=8 keep f32.
    s = lax.dot_general(a_n, p_n, (((1,), (1,)), ((), ())),
                        preferred_element_type=jnp.float32)       # (n_pad, n_pad)
    # Diagonal a_i . p_i computed directly — no (n, n) iota / select / reduce.
    diag = jnp.sum(a_n * p_n, axis=-1, keepdims=True)             # (n_pad, 1)
    arg = (s - diag) * inv_tao                                    # arg[i, i] == 0
    if n < n_pad:  # static: only emitted when padding exists
        col = lax.broadcasted_iota(jnp.int32, (n_pad, n_pad), 1)
        arg = jnp.where(col < n, arg, _NEG_BIG)
    # log(1 + sum_{j != i} exp(arg_ij)) == logsumexp_j(arg_ij) because the
    # diagonal contributes exp(0) == 1.  Row-max subtraction (m >= 0 since the
    # diagonal is 0) keeps this exact here and safe for any tao.
    m = jnp.max(arg, axis=-1, keepdims=True)
    per_row = m + jnp.log(jnp.sum(jnp.exp(arg - m), axis=-1, keepdims=True))

    combined = per_row + l2_reg * l2_rows
    if n < n_pad:
        row = lax.broadcasted_iota(jnp.int32, (n_pad, 1), 0)
        combined = jnp.where(row < n, combined, 0.0)
    total = jnp.sum(combined, axis=0, keepdims=True) * inv_n      # (1, 1)
    # Lane-dense output row; element [0, 0] carries the loss.
    return jnp.broadcast_to(total, o_shape)


def _make_vmem_table_kernel(n, n_pad, tao, l2_reg):
    """Small-table path: whole embedding table lives in VMEM (one auto-DMA);
    rows are gathered with on-chip dynamic slices — no manual DMAs at all."""
    inv_tao = 1.0 / float(tao)
    inv_n = 1.0 / float(n)
    eps_sq = EPS * EPS  # max(||x||, eps)^2 == max(||x||^2, eps^2)

    def kernel(idx_ref, emb_ref, o_ref, g_buf):
        # On-chip gather.  idx_ref (SMEM int32 (2*n_pad,)): anchors first, then
        # positives; padded entries point at row 0 and are masked in the tail.
        for i in range(2 * n_pad):
            g_buf[pl.ds(i, 1), :] = emb_ref[pl.ds(idx_ref[i], 1), :]

        g = g_buf[...].astype(jnp.float32)                        # (2*n_pad, D)
        # One fused row-normalize over anchors+positives (single reduce, single
        # rsqrt on the EUP, single scale): F.normalize == x / max(||x||, eps).
        ssq = jnp.sum(g * g, axis=-1, keepdims=True)              # (2*n_pad, 1)
        inv = lax.rsqrt(jnp.maximum(ssq, eps_sq))
        gn = g * inv
        # L2 regularizer reuses the squared norms: ||x/max(||x||,eps)||^2.
        l2_all = ssq * (inv * inv)                                # (2*n_pad, 1)
        # 8-row-aligned f32 halves: views, no tile-boundary relayout.
        o_ref[...] = _pair_loss_tail(
            gn[:n_pad], gn[n_pad:], l2_all[:n_pad] + l2_all[n_pad:],
            o_ref.shape, n=n, n_pad=n_pad, inv_tao=inv_tao, inv_n=inv_n,
            l2_reg=l2_reg)

    return kernel


def _make_hbm_gather_kernel(n, n_pad, tao, l2_reg):
    """Large-table path: embeddings stay in HBM; per-selected-row DMA gather with
    two shared semaphores and anchor-side compute overlapped with the in-flight
    positive copies."""
    inv_tao = 1.0 / float(tao)
    inv_n = 1.0 / float(n)
    eps_sq = EPS * EPS

    def kernel(idx_ref, emb_ref, o_ref, g_buf, sems):
        d = g_buf.shape[1]
        # Padded rows: one-time zero fill instead of wasted DMA descriptors
        # (the row/col masks in the tail neutralize them regardless).
        if n < n_pad:
            zeros = jnp.zeros((n_pad - n, d), dtype=g_buf.dtype)
            g_buf[pl.ds(n, n_pad - n), :] = zeros
            g_buf[pl.ds(n_pad + n, n_pad - n), :] = zeros

        def a_copy(i):
            return pltpu.make_async_copy(
                emb_ref.at[pl.ds(idx_ref[i], 1)],
                g_buf.at[pl.ds(i, 1)], sems.at[0])

        def p_copy(i):
            return pltpu.make_async_copy(
                emb_ref.at[pl.ds(idx_ref[n_pad + i], 1)],
                g_buf.at[pl.ds(n_pad + i, 1)], sems.at[1])

        if n <= _MAX_UNROLLED_DMA:
            a_copies, p_copies = [], []
            for i in range(n):            # valid rows only — no padded DMAs
                ca, cp = a_copy(i), p_copy(i)
                ca.start()
                cp.start()
                a_copies.append(ca)
                p_copies.append(cp)

            def wait_anchors():
                for c in a_copies:
                    c.wait()

            def wait_positives():
                for c in p_copies:
                    c.wait()
        else:
            # Rolled issue/wait keeps the instruction stream compact for large n.
            @pl.loop(0, n)
            def _issue(i):
                a_copy(i).start()
                p_copy(i).start()

            def _wait_all(mk):
                @pl.loop(0, n)
                def _(_i):
                    mk(0).wait()   # same-size descriptor on the shared sem

            def wait_anchors():
                _wait_all(a_copy)

            def wait_positives():
                _wait_all(p_copy)

        # Overlap: consume anchors while positive rows are still in flight.
        wait_anchors()
        a = g_buf[pl.ds(0, n_pad), :].astype(jnp.float32)         # (n_pad, D)
        sa = jnp.sum(a * a, axis=-1, keepdims=True)
        inv_a = lax.rsqrt(jnp.maximum(sa, eps_sq))
        a_n = a * inv_a

        wait_positives()
        p = g_buf[pl.ds(n_pad, n_pad), :].astype(jnp.float32)
        sp = jnp.sum(p * p, axis=-1, keepdims=True)
        inv_p = lax.rsqrt(jnp.maximum(sp, eps_sq))
        p_n = p * inv_p

        l2_rows = sa * (inv_a * inv_a) + sp * (inv_p * inv_p)     # (n_pad, 1)
        o_ref[...] = _pair_loss_tail(a_n, p_n, l2_rows, o_ref.shape,
                                     n=n, n_pad=n_pad, inv_tao=inv_tao,
                                     inv_n=inv_n, l2_reg=l2_reg)

    return kernel


def npair_loss_pallas(embeddings, n_pairs, *, tao=TAO, l2_reg=L2_REG,
                      force_hbm_gather=False):
    """embeddings: (B, D) float array; n_pairs: (n, 2) host int array.

    Returns the scalar N-pair loss + l2_reg * L2 regularizer.
    """
    n_pairs = np.asarray(n_pairs)
    n = int(n_pairs.shape[0])
    if n < 1:
        raise ValueError("need at least one (anchor, positive) pair")
    B, D = embeddings.shape

    # Pad the pair count to a multiple of 8 so (n, D)/(n, n) tiles stay
    # (8, 128)-friendly; padded index entries point at row 0 and are masked.
    n_pad = max(8, ((n + 7) // 8) * 8)
    # 1-D SMEM index vector (anchors, then positives): s32[2*n_pad] pads to a
    # handful of words instead of the ~4 KiB a 2-D s32[2, n_pad] buffer takes.
    idx = np.zeros((2 * n_pad,), dtype=np.int32)
    idx[:n] = n_pairs[:, 0]
    idx[n_pad:n_pad + n] = n_pairs[:, 1]

    table_bytes = int(B) * int(D) * np.dtype(embeddings.dtype).itemsize
    small_table = (table_bytes <= _SMALL_TABLE_BYTES) and not force_hbm_gather

    scratch = [pltpu.VMEM((2 * n_pad, D), embeddings.dtype)]  # gathered rows
    if small_table:
        kernel = _make_vmem_table_kernel(n, n_pad, tao, l2_reg)
        # Whole table auto-DMA'd to VMEM once — the single biggest win at this
        # size vs. 2*n_pad tiny per-row HBM copies.
        emb_spec = pl.BlockSpec(memory_space=pltpu.MemorySpace.VMEM)
    else:
        kernel = _make_hbm_gather_kernel(n, n_pad, tao, l2_reg)
        emb_spec = pl.BlockSpec(memory_space=pl.ANY)          # stays in HBM
        scratch.append(pltpu.SemaphoreType.DMA((2,)))         # anchor / positive sems

    out = pl.pallas_call(
        kernel,
        out_shape=jax.ShapeDtypeStruct((1, 128), jnp.float32),  # lane-dense row
        in_specs=[
            pl.BlockSpec(memory_space=pltpu.MemorySpace.SMEM),   # pair indices
            emb_spec,                                            # embeddings
        ],
        out_specs=pl.BlockSpec(memory_space=pltpu.MemorySpace.VMEM),
        scratch_shapes=scratch,
    )(jnp.asarray(idx), embeddings)
    return out[0, 0]


def get_n_pairs(labels_np, rng):
    """Host-side replica of NPairLoss.get_n_pairs (numpy RNG, like the module)."""
    n_pairs = []
    for label in sorted(set(labels_np.tolist())):
        label_indices = np.where(labels_np == label)[0]
        if len(label_indices) < 2:
            continue
        anchor, positive = rng.choice(label_indices, 2, replace=False)
        n_pairs.append([anchor, positive])
    n_pairs = np.array(n_pairs, dtype=np.int64)
    n_negatives = []
    for i in range(len(n_pairs)):
        negative = np.concatenate([n_pairs[:i, 1], n_pairs[i + 1:, 1]])
        n_negatives.append(negative)
    n_negatives = np.array(n_negatives, dtype=np.int64)
    return n_pairs, n_negatives


def npair_loss_forward(embeddings, labels_np, rng, **kw):
    """Full forward: index construction on host; gather + loss in one Pallas call."""
    n_pairs, _n_negatives = get_n_pairs(labels_np, rng)
    return npair_loss_pallas(embeddings, n_pairs, **kw)


def _reference_numpy(embeddings, labels_np, rng):
    """Pure numpy reference mirroring the PyTorch code path."""
    emb = np.asarray(embeddings, dtype=np.float32)
    norm = np.maximum(np.linalg.norm(emb, axis=1, keepdims=True), EPS)
    emb_n = emb / norm
    n_pairs, n_negatives = get_n_pairs(labels_np, rng)
    a = emb_n[n_pairs[:, 0]]            # (n, D)
    p = emb_n[n_pairs[:, 1]]            # (n, D)
    neg = emb_n[n_negatives]            # (n, n-1, D)
    x = np.einsum('nd,nkd->nk', a, neg - p[:, None, :]) / TAO
    x = np.sum(np.exp(x), axis=1)
    loss_np = np.mean(np.log(1.0 + x))
    l2 = np.sum(a ** 2 + p ** 2) / a.shape[0]
    return loss_np + L2_REG * l2


if __name__ == "__main__":
    B, D = 16, 128
    key = jax.random.PRNGKey(0)
    embeddings = jax.random.normal(key, (B, D), dtype=jnp.float32)

    # Case 1: 8 classes x 2 samples -> n = 8 pairs (no padding path).
    labels1 = np.repeat(np.arange(8), B // 8).astype(np.int64)
    # Case 2: 5 classes -> n = 5 pairs (exercises the pad-to-8 + mask path).
    labels2 = np.array([0, 0, 0, 1, 1, 1, 2, 2, 2, 3, 3, 3, 4, 4, 4, 4],
                       dtype=np.int64)

    for labels, seed in ((labels1, 0), (labels2, 1)):
        ref = _reference_numpy(embeddings, labels, np.random.RandomState(seed))
        # Small-table path (whole table in VMEM, on-chip gather).
        loss = jax.block_until_ready(
            npair_loss_forward(embeddings, labels, np.random.RandomState(seed)))
        assert np.allclose(float(loss), float(ref), rtol=2e-5, atol=2e-5), (loss, ref)
        # Large-table path (per-row HBM DMA gather), forced here for coverage.
        loss_hbm = jax.block_until_ready(
            npair_loss_forward(embeddings, labels, np.random.RandomState(seed),
                               force_hbm_gather=True))
        assert np.allclose(float(loss_hbm), float(ref), rtol=2e-5, atol=2e-5), (
            loss_hbm, ref)

    print("KERNEL_OK")
</pallas_src>

<mosaic_0001>
module attributes {stable_mosaic.version = 11 : i64} {
  func.func @kernel(%arg0: memref<16xi32, #tpu.memory_space<smem>>, %arg1: memref<16x128xf32, #tpu.memory_space<vmem>>, %arg2: memref<1x128xf32, #tpu.memory_space<vmem>>, %arg3: memref<16x128xf32, #tpu.memory_space<vmem>>) attributes {dimension_semantics = [], scalar_prefetch = 0 : i64, scratch_operands = 1 : i64, tpu.core_type = #tpu.core_type<tc>} {
    %c0 = arith.constant 0 : index
    %0 = memref.load %arg0[%c0] : memref<16xi32, #tpu.memory_space<smem>>
    %1 = arith.index_cast %0 : i32 to index
    %c0_0 = arith.constant 0 : index
    %2 = vector.load %arg1[%1, %c0_0] : memref<16x128xf32, #tpu.memory_space<vmem>>, vector<1x128xf32>
    %c0_1 = arith.constant 0 : index
    %c0_2 = arith.constant 0 : index
    %3 = vector.load %arg3[%c0_1, %c0_2] : memref<16x128xf32, #tpu.memory_space<vmem>>, vector<1x128xf32>
    tpu.vector_store %arg3[%c0_1, %c0_2], %2 {strides = array<i32>} : memref<16x128xf32, #tpu.memory_space<vmem>>, vector<1x128xf32>,
    %c1 = arith.constant 1 : index
    %4 = memref.load %arg0[%c1] : memref<16xi32, #tpu.memory_space<smem>>
    %5 = arith.index_cast %4 : i32 to index
    %c0_3 = arith.constant 0 : index
    %6 = vector.load %arg1[%5, %c0_3] : memref<16x128xf32, #tpu.memory_space<vmem>>, vector<1x128xf32>
    %c1_4 = arith.constant 1 : index
    %c0_5 = arith.constant 0 : index
    %7 = vector.load %arg3[%c1_4, %c0_5] : memref<16x128xf32, #tpu.memory_space<vmem>>, vector<1x128xf32>
    tpu.vector_store %arg3[%c1_4, %c0_5], %6 {strides = array<i32>} : memref<16x128xf32, #tpu.memory_space<vmem>>, vector<1x128xf32>,
    %c2 = arith.constant 2 : index
    %8 = memref.load %arg0[%c2] : memref<16xi32, #tpu.memory_space<smem>>
    %9 = arith.index_cast %8 : i32 to index
    %c0_6 = arith.constant 0 : index
    %10 = vector.load %arg1[%9, %c0_6] : memref<16x128xf32, #tpu.memory_space<vmem>>, vector<1x128xf32>
    %c2_7 = arith.constant 2 : index
    %c0_8 = arith.constant 0 : index
    %11 = vector.load %arg3[%c2_7, %c0_8] : memref<16x128xf32, #tpu.memory_space<vmem>>, vector<1x128xf32>
    tpu.vector_store %arg3[%c2_7, %c0_8], %10 {strides = array<i32>} : memref<16x128xf32, #tpu.memory_space<vmem>>, vector<1x128xf32>,
    %c3 = arith.constant 3 : index
    %12 = memref.load %arg0[%c3] : memref<16xi32, #tpu.memory_space<smem>>
    %13 = arith.index_cast %12 : i32 to index
    %c0_9 = arith.constant 0 : index
    %14 = vector.load %arg1[%13, %c0_9] : memref<16x128xf32, #tpu.memory_space<vmem>>, vector<1x128xf32>
    %c3_10 = arith.constant 3 : index
    %c0_11 = arith.constant 0 : index
    %15 = vector.load %arg3[%c3_10, %c0_11] : memref<16x128xf32, #tpu.memory_space<vmem>>, vector<1x128xf32>
    tpu.vector_store %arg3[%c3_10, %c0_11], %14 {strides = array<i32>} : memref<16x128xf32, #tpu.memory_space<vmem>>, vector<1x128xf32>,
    %c4 = arith.constant 4 : index
    %16 = memref.load %arg0[%c4] : memref<16xi32, #tpu.memory_space<smem>>
    %17 = arith.index_cast %16 : i32 to index
    %c0_12 = arith.constant 0 : index
    %18 = vector.load %arg1[%17, %c0_12] : memref<16x128xf32, #tpu.memory_space<vmem>>, vector<1x128xf32>
    %c4_13 = arith.constant 4 : index
    %c0_14 = arith.constant 0 : index
    %19 = vector.load %arg3[%c4_13, %c0_14] : memref<16x128xf32, #tpu.memory_space<vmem>>, vector<1x128xf32>
    tpu.vector_store %arg3[%c4_13, %c0_14], %18 {strides = array<i32>} : memref<16x128xf32, #tpu.memory_space<vmem>>, vector<1x128xf32>,
    %c5 = arith.constant 5 : index
    %20 = memref.load %arg0[%c5] : memref<16xi32, #tpu.memory_space<smem>>
    %21 = arith.index_cast %20 : i32 to index
    %c0_15 = arith.constant 0 : index
    %22 = vector.load %arg1[%21, %c0_15] : memref<16x128xf32, #tpu.memory_space<vmem>>, vector<1x128xf32>
    %c5_16 = arith.constant 5 : index
    %c0_17 = arith.constant 0 : index
    %23 = vector.load %arg3[%c5_16, %c0_17] : memref<16x128xf32, #tpu.memory_space<vmem>>, vector<1x128xf32>
    tpu.vector_store %arg3[%c5_16, %c0_17], %22 {strides = array<i32>} : memref<16x128xf32, #tpu.memory_space<vmem>>, vector<1x128xf32>,
    %c6 = arith.constant 6 : index
    %24 = memref.load %arg0[%c6] : memref<16xi32, #tpu.memory_space<smem>>
    %25 = arith.index_cast %24 : i32 to index
    %c0_18 = arith.constant 0 : index
    %26 = vector.load %arg1[%25, %c0_18] : memref<16x128xf32, #tpu.memory_space<vmem>>, vector<1x128xf32>
    %c6_19 = arith.constant 6 : index
    %c0_20 = arith.constant 0 : index
    %27 = vector.load %arg3[%c6_19, %c0_20] : memref<16x128xf32, #tpu.memory_space<vmem>>, vector<1x128xf32>
    tpu.vector_store %arg3[%c6_19, %c0_20], %26 {strides = array<i32>} : memref<16x128xf32, #tpu.memory_space<vmem>>, vector<1x128xf32>,
    %c7 = arith.constant 7 : index
    %28 = memref.load %arg0[%c7] : memref<16xi32, #tpu.memory_space<smem>>
    %29 = arith.index_cast %28 : i32 to index
    %c0_21 = arith.constant 0 : index
    %30 = vector.load %arg1[%29, %c0_21] : memref<16x128xf32, #tpu.memory_space<vmem>>, vector<1x128xf32>
    %c7_22 = arith.constant 7 : index
    %c0_23 = arith.constant 0 : index
    %31 = vector.load %arg3[%c7_22, %c0_23] : memref<16x128xf32, #tpu.memory_space<vmem>>, vector<1x128xf32>
    tpu.vector_store %arg3[%c7_22, %c0_23], %30 {strides = array<i32>} : memref<16x128xf32, #tpu.memory_space<vmem>>, vector<1x128xf32>,
    %c8 = arith.constant 8 : index
    %32 = memref.load %arg0[%c8] : memref<16xi32, #tpu.memory_space<smem>>
    %33 = arith.index_cast %32 : i32 to index
    %c0_24 = arith.constant 0 : index
    %34 = vector.load %arg1[%33, %c0_24] : memref<16x128xf32, #tpu.memory_space<vmem>>, vector<1x128xf32>
    %c8_25 = arith.constant 8 : index
    %c0_26 = arith.constant 0 : index
    %35 = vector.load %arg3[%c8_25, %c0_26] : memref<16x128xf32, #tpu.memory_space<vmem>>, vector<1x128xf32>
    tpu.vector_store %arg3[%c8_25, %c0_26], %34 {strides = array<i32>} : memref<16x128xf32, #tpu.memory_space<vmem>>, vector<1x128xf32>,
    %c9 = arith.constant 9 : index
    %36 = memref.load %arg0[%c9] : memref<16xi32, #tpu.memory_space<smem>>
    %37 = arith.index_cast %36 : i32 to index
    %c0_27 = arith.constant 0 : index
    %38 = vector.load %arg1[%37, %c0_27] : memref<16x128xf32, #tpu.memory_space<vmem>>, vector<1x128xf32>
    %c9_28 = arith.constant 9 : index
    %c0_29 = arith.constant 0 : index
    %39 = vector.load %arg3[%c9_28, %c0_29] : memref<16x128xf32, #tpu.memory_space<vmem>>, vector<1x128xf32>
    tpu.vector_store %arg3[%c9_28, %c0_29], %38 {strides = array<i32>} : memref<16x128xf32, #tpu.memory_space<vmem>>, vector<1x128xf32>,
    %c10 = arith.constant 10 : index
    %40 = memref.load %arg0[%c10] : memref<16xi32, #tpu.memory_space<smem>>
    %41 = arith.index_cast %40 : i32 to index
    %c0_30 = arith.constant 0 : index
    %42 = vector.load %arg1[%41, %c0_30] : memref<16x128xf32, #tpu.memory_space<vmem>>, vector<1x128xf32>
    %c10_31 = arith.constant 10 : index
    %c0_32 = arith.constant 0 : index
    %43 = vector.load %arg3[%c10_31, %c0_32] : memref<16x128xf32, #tpu.memory_space<vmem>>, vector<1x128xf32>
    tpu.vector_store %arg3[%c10_31, %c0_32], %42 {strides = array<i32>} : memref<16x128xf32, #tpu.memory_space<vmem>>, vector<1x128xf32>,
    %c11 = arith.constant 11 : index
    %44 = memref.load %arg0[%c11] : memref<16xi32, #tpu.memory_space<smem>>
    %45 = arith.index_cast %44 : i32 to index
    %c0_33 = arith.constant 0 : index
    %46 = vector.load %arg1[%45, %c0_33] : memref<16x128xf32, #tpu.memory_space<vmem>>, vector<1x128xf32>
    %c11_34 = arith.constant 11 : index
    %c0_35 = arith.constant 0 : index
    %47 = vector.load %arg3[%c11_34, %c0_35] : memref<16x128xf32, #tpu.memory_space<vmem>>, vector<1x128xf32>
    tpu.vector_store %arg3[%c11_34, %c0_35], %46 {strides = array<i32>} : memref<16x128xf32, #tpu.memory_space<vmem>>, vector<1x128xf32>,
    %c12 = arith.constant 12 : index
    %48 = memref.load %arg0[%c12] : memref<16xi32, #tpu.memory_space<smem>>
    %49 = arith.index_cast %48 : i32 to index
    %c0_36 = arith.constant 0 : index
    %50 = vector.load %arg1[%49, %c0_36] : memref<16x128xf32, #tpu.memory_space<vmem>>, vector<1x128xf32>
    %c12_37 = arith.constant 12 : index
    %c0_38 = arith.constant 0 : index
    %51 = vector.load %arg3[%c12_37, %c0_38] : memref<16x128xf32, #tpu.memory_space<vmem>>, vector<1x128xf32>
    tpu.vector_store %arg3[%c12_37, %c0_38], %50 {strides = array<i32>} : memref<16x128xf32, #tpu.memory_space<vmem>>, vector<1x128xf32>,
    %c13 = arith.constant 13 : index
    %52 = memref.load %arg0[%c13] : memref<16xi32, #tpu.memory_space<smem>>
    %53 = arith.index_cast %52 : i32 to index
    %c0_39 = arith.constant 0 : index
    %54 = vector.load %arg1[%53, %c0_39] : memref<16x128xf32, #tpu.memory_space<vmem>>, vector<1x128xf32>
    %c13_40 = arith.constant 13 : index
    %c0_41 = arith.constant 0 : index
    %55 = vector.load %arg3[%c13_40, %c0_41] : memref<16x128xf32, #tpu.memory_space<vmem>>, vector<1x128xf32>
    tpu.vector_store %arg3[%c13_40, %c0_41], %54 {strides = array<i32>} : memref<16x128xf32, #tpu.memory_space<vmem>>, vector<1x128xf32>,
    %c14 = arith.constant 14 : index
    %56 = memref.load %arg0[%c14] : memref<16xi32, #tpu.memory_space<smem>>
    %57 = arith.index_cast %56 : i32 to index
    %c0_42 = arith.constant 0 : index
    %58 = vector.load %arg1[%57, %c0_42] : memref<16x128xf32, #tpu.memory_space<vmem>>, vector<1x128xf32>
    %c14_43 = arith.constant 14 : index
    %c0_44 = arith.constant 0 : index
    %59 = vector.load %arg3[%c14_43, %c0_44] : memref<16x128xf32, #tpu.memory_space<vmem>>, vector<1x128xf32>
    tpu.vector_store %arg3[%c14_43, %c0_44], %58 {strides = array<i32>} : memref<16x128xf32, #tpu.memory_space<vmem>>, vector<1x128xf32>,
    %c15 = arith.constant 15 : index
    %60 = memref.load %arg0[%c15] : memref<16xi32, #tpu.memory_space<smem>>
    %61 = arith.index_cast %60 : i32 to index
    %c0_45 = arith.constant 0 : index
    %62 = vector.load %arg1[%61, %c0_45] : memref<16x128xf32, #tpu.memory_space<vmem>>, vector<1x128xf32>
    %c15_46 = arith.constant 15 : index
    %c0_47 = arith.constant 0 : index
    %63 = vector.load %arg3[%c15_46, %c0_47] : memref<16x128xf32, #tpu.memory_space<vmem>>, vector<1x128xf32>
    tpu.vector_store %arg3[%c15_46, %c0_47], %62 {strides = array<i32>} : memref<16x128xf32, #tpu.memory_space<vmem>>, vector<1x128xf32>,
    %c0_48 = arith.constant 0 : index
    %c0_49 = arith.constant 0 : index
    %64 = vector.load %arg3[%c0_48, %c0_49] : memref<16x128xf32, #tpu.memory_space<vmem>>, vector<16x128xf32>
    %65 = arith.mulf %64, %64 : vector<16x128xf32>
    %cst = arith.constant dense<0.000000e+00> : vector<16xf32>
    %66 = vector.multi_reduction <add>, %65, %cst [1] : vector<16x128xf32> to vector<16xf32>
    %67 = vector.shape_cast %66 : vector<16xf32> to vector<16x1xf32>
    %cst_50 = arith.constant 1.000000e-24 : f32
    %68 = vector.broadcast %cst_50 : f32 to vector<16x1xf32>
    %69 = arith.maximumf %67, %68 : vector<16x1xf32>
    %70 = math.rsqrt %69 : vector<16x1xf32>
    %71 = vector.broadcast %70 : vector<16x1xf32> to vector<16x128xf32>
    %72 = arith.mulf %64, %71 : vector<16x128xf32>
    %73 = arith.mulf %70, %70 : vector<16x1xf32>
    %74 = arith.mulf %67, %73 : vector<16x1xf32>
    %75 = vector.extract_strided_slice %72 {offsets = [0, 0], sizes = [8, 128], strides = [1, 1]} : vector<16x128xf32> to vector<8x128xf32>
    %76 = vector.extract_strided_slice %72 {offsets = [8, 0], sizes = [8, 128], strides = [1, 1]} : vector<16x128xf32> to vector<8x128xf32>
    %77 = vector.extract_strided_slice %74 {offsets = [0, 0], sizes = [8, 1], strides = [1, 1]} : vector<16x1xf32> to vector<8x1xf32>
    %78 = vector.extract_strided_slice %74 {offsets = [8, 0], sizes = [8, 1], strides = [1, 1]} : vector<16x1xf32> to vector<8x1xf32>
    %79 = arith.addf %77, %78 : vector<8x1xf32>
    %cst_51 = arith.constant dense<0.000000e+00> : vector<8x8xf32>
    %80 = tpu.matmul %75, %76, %cst_51 {dimension_numbers = #tpu.dot_dimension_numbers<[1], [1], [0], [0], [0, 0, 1, 0], [], []>} : vector<8x128xf32>, vector<8x128xf32>, vector<8x8xf32> -> vector<8x8xf32>
    %81 = arith.mulf %75, %76 : vector<8x128xf32>
    %cst_52 = arith.constant dense<0.000000e+00> : vector<8xf32>
    %82 = vector.multi_reduction <add>, %81, %cst_52 [1] : vector<8x128xf32> to vector<8xf32>
    %83 = vector.shape_cast %82 : vector<8xf32> to vector<8x1xf32>
    %84 = vector.broadcast %83 : vector<8x1xf32> to vector<8x8xf32>
    %85 = arith.subf %80, %84 : vector<8x8xf32>
    %cst_53 = arith.constant 1.000000e+00 : f32
    %86 = vector.broadcast %cst_53 : f32 to vector<8x8xf32>
    %87 = arith.mulf %85, %86 : vector<8x8xf32>
    %cst_54 = arith.constant dense<0xFF800000> : vector<8xf32>
    %88 = vector.multi_reduction <maximumf>, %87, %cst_54 [1] : vector<8x8xf32> to vector<8xf32>
    %89 = vector.shape_cast %88 : vector<8xf32> to vector<8x1xf32>
    %90 = vector.broadcast %89 : vector<8x1xf32> to vector<8x8xf32>
    %91 = arith.subf %87, %90 : vector<8x8xf32>
    %92 = math.exp %91 : vector<8x8xf32>
    %cst_55 = arith.constant dense<0.000000e+00> : vector<8xf32>
    %93 = vector.multi_reduction <add>, %92, %cst_55 [1] : vector<8x8xf32> to vector<8xf32>
    %94 = vector.shape_cast %93 : vector<8xf32> to vector<8x1xf32>
    %95 = math.log %94 : vector<8x1xf32>
    %96 = arith.addf %89, %95 : vector<8x1xf32>
    %cst_56 = arith.constant 2.000000e-02 : f32
    %97 = vector.broadcast %cst_56 : f32 to vector<8x1xf32>
    %98 = arith.mulf %97, %79 : vector<8x1xf32>
    %99 = arith.addf %96, %98 : vector<8x1xf32>
    %cst_57 = arith.constant dense<0.000000e+00> : vector<1xf32>
    %100 = vector.multi_reduction <add>, %99, %cst_57 [0] : vector<8x1xf32> to vector<1xf32>
    %101 = vector.shape_cast %100 : vector<1xf32> to vector<1x1xf32>
    %cst_58 = arith.constant 1.250000e-01 : f32
    %102 = vector.broadcast %cst_58 : f32 to vector<1x1xf32>
    %103 = arith.mulf %101, %102 : vector<1x1xf32>
    %104 = vector.shape_cast %103 : vector<1x1xf32> to vector<1x1xf32>
    %105 = vector.broadcast %104 : vector<1x1xf32> to vector<1x128xf32>
    %c0_59 = arith.constant 0 : index
    %c0_60 = arith.constant 0 : index
    %106 = vector.load %arg2[%c0_59, %c0_60] : memref<1x128xf32, #tpu.memory_space<vmem>>, vector<1x128xf32>
    tpu.vector_store %arg2[%c0_59, %c0_60], %105 {strides = array<i32>} : memref<1x128xf32, #tpu.memory_space<vmem>>, vector<1x128xf32>,
    return
  }
}

</mosaic_0001>

<bundles_post_ra>
// kernel: tpu_custom_call.1
= control target key start
LH: loop header
LB: loop body
LE: loop exit
PB: predicated region body
PF: predicated region fallthrough
CT: control target
= control target key end

     0   :  { %7 = vsyncpa [#allocation6], 0  ;;  %s346_s0 = inlined_call_operand.hbm [shape: s32[16], index: 0, kind: input, shape index: {}]   ;;  %s347_s1 = inlined_call_operand.hbm [shape: f32[16,128], index: 1, kind: input, shape index: {}]   ;;  %s348_s2 = inlined_call_operand.hbm [shape: f32[1,128], index: 2, kind: output, shape index: {}]  }
   0x1   :  { %8 = vsyncpa [#allocation4], 0 }
   0x2   :  { %9 = vsyncpa [#allocation5], 0  ;;  %s15_s11 = sshll.u32 %s346_s0, 4  ;;  %s23_s14 = sshll.u32 %s347_s1, 4  ;;  %s16_s11 = int_to_ptr.hbm [resolvable:$true] %s15_s11  ;;  %s24_s14 = int_to_ptr.hbm [resolvable:$true] %s23_s14 }
   0x3   :  { %s317_s15 = smov [#allocation3]   ;;  %s318_s16 = smov [#allocation7]  }
   0x4   :  { %18 = dma.hbm_to_smem %s16_s11, 16, %s317_s15, [#allocation6]  }
   0x5   :  { %s25_s17 = sshll.u32 %s318_s16, 4  ;;  %s319_s18 = smov 128   ;;  %s26_s17 = int_to_ptr.vmem [resolvable:$true] %s25_s17 }
   0x6   :  { %s320_s19 = smov 8  }
   0x7   :  { %31 = dma.hbm_to_vmem [thread:$0]  %s24_s14, 256, %s26_s17, [#allocation4], %s319_s18, %s319_s18, %s320_s19  }
   0x8   :  { %311 = dma.done.wait [#allocation6], 16  }
   0x9   :  { %312 = vsyncadd [#allocation6], 4294967280 }
   0xa   :  { %313 = dma.done.wait [#allocation4], 256  }
   0xb   :  { %314 = vsyncadd [#allocation4], 4294967040 }
   0xc   :  { %40 = sfence }
   0xd   :  { %s230_s0 = sld [smem:[#allocation3 + $0x8]]  ;;  %vm166_vm6 = vcmask 64512  }
   0xe   :  { %s231_s20 = sld [smem:[#allocation3 + $0x9]] }
   0xf   :  { %s232_s21 = sld [smem:[#allocation3 + $0xa]] }
  0x10   :  { %s233_s22 = sld [smem:[#allocation3 + $0xb]] }
  0x11   :  { %s234_s23 = sld [smem:[#allocation3 + $0xc]] }
  0x12   :  { %s235_s1 = sld [smem:[#allocation3 + $0xd]] }
  0x13   :  { %s236_s24 = sld [smem:[#allocation3 + $0xe]]  ;;  %s74_s25 = scalar_lea.vmem [#allocation7], %s230_s0 }
  0x14   :  { %v75_v0 = vld [vmem:[%s74_s25] sm:$0x1]  ;;  %s237_s26 = sld [smem:[#allocation3 + $0xf]]  ;;  %s78_s27 = scalar_lea.vmem [#allocation7], %s231_s20 }
  0x15   :  { %76 = vst [vmem:[#allocation2 + $0x8] sm:$0x1] %v75_v0  ;;  %v79_v1 = vld [vmem:[%s78_s27] sm:$0x1]  ;;  %s82_s28 = scalar_lea.vmem [#allocation7], %s232_s21  ;;  %s41_s6 = sld [smem:[#allocation3]] }
  0x16   :  { %80 = vst [vmem:[#allocation2 + $0x9] sm:$0x1] %v79_v1  ;;  %v83_v2 = vld [vmem:[%s82_s28] sm:$0x1]  ;;  %s86_s29 = scalar_lea.vmem [#allocation7], %s233_s22  ;;  %s223_s7 = sld [smem:[#allocation3 + $0x1]] }
  0x17   :  { %84 = vst [vmem:[#allocation2 + $0xa] sm:$0x1] %v83_v2  ;;  %v87_v3 = vld [vmem:[%s86_s29] sm:$0x1]  ;;  %s90_s30 = scalar_lea.vmem [#allocation7], %s234_s23  ;;  %s224_s8 = sld [smem:[#allocation3 + $0x2]] }
  0x18   :  { %88 = vst [vmem:[#allocation2 + $0xb] sm:$0x1] %v87_v3  ;;  %v91_v4 = vld [vmem:[%s90_s30] sm:$0x1]  ;;  %s94_s3 = scalar_lea.vmem [#allocation7], %s235_s1  ;;  %s225_s9 = sld [smem:[#allocation3 + $0x3]] }
  0x19   :  { %92 = vst [vmem:[#allocation2 + $0xc] sm:$0x1] %v91_v4  ;;  %v95_v5 = vld [vmem:[%s94_s3] sm:$0x1]  ;;  %s98_s4 = scalar_lea.vmem [#allocation7], %s236_s24  ;;  %s226_s10 = sld [smem:[#allocation3 + $0x4]] }
  0x1a   :  { %96 = vst [vmem:[#allocation2 + $0xd] sm:$0x1] %v95_v5  ;;  %v99_v6 = vld [vmem:[%s98_s4] sm:$0x1]  ;;  %s102_s5 = scalar_lea.vmem [#allocation7], %s237_s26  ;;  %s227_s11 = sld [smem:[#allocation3 + $0x5]] }
  0x1b   :  { %100 = vst [vmem:[#allocation2 + $0xe] sm:$0x1] %v99_v6  ;;  %v103_v7 = vld [vmem:[%s102_s5] sm:$0x1]  ;;  %s228_s12 = sld [smem:[#allocation3 + $0x6]]  ;;  %s42_s13 = scalar_lea.vmem [#allocation7], %s41_s6 }
  0x1c   :  { %104 = vst [vmem:[#allocation2 + $0xf] sm:$0x1] %v103_v7  ;;  %v43_v8 = vld [vmem:[%s42_s13] sm:$0x1]  ;;  %s229_s14 = sld [smem:[#allocation3 + $0x7]]  ;;  %s46_s15 = scalar_lea.vmem [#allocation7], %s223_s7 }
  0x1d   :  { %44 = vst [vmem:[#allocation2] sm:$0x1] %v43_v8  ;;  %v47_v10 = vld [vmem:[%s46_s15] sm:$0x1]  ;;  %s50_s16 = scalar_lea.vmem [#allocation7], %s224_s8  ;;  %s321_s21 = smov [#allocation8]  }
  0x1e   :  { %48 = vst [vmem:[#allocation2 + $0x1] sm:$0x1] %v47_v10  ;;  %v51_v12 = vld [vmem:[%s50_s16] sm:$0x1]  ;;  %s54_s17 = scalar_lea.vmem [#allocation7], %s225_s9  ;;  %s194_s22 = sshll.u32 %s321_s21, 4  ;;  %s195_s22 = int_to_ptr.vmem [resolvable:$true] %s194_s22 }
  0x1f   :  { %52 = vst [vmem:[#allocation2 + $0x2] sm:$0x1] %v51_v12  ;;  %v55_v13 = vld [vmem:[%s54_s17] sm:$0x1]  ;;  %s58_s18 = scalar_lea.vmem [#allocation7], %s226_s10  ;;  %s196_s24 = sshll.u32 %s348_s2, 4  ;;  %s197_s24 = int_to_ptr.hbm [resolvable:$true] %s196_s24 }
  0x20   :  { %56 = vst [vmem:[#allocation2 + $0x3] sm:$0x1] %v55_v13  ;;  %v59_v14 = vld [vmem:[%s58_s18] sm:$0x1]  ;;  %s62_s19 = scalar_lea.vmem [#allocation7], %s227_s11 }
  0x21   :  { %60 = vst [vmem:[#allocation2 + $0x4] sm:$0x1] %v59_v14  ;;  %v63_v15 = vld [vmem:[%s62_s19] sm:$0x1]  ;;  %s66_s0 = scalar_lea.vmem [#allocation7], %s228_s12 }
  0x22   :  { %64 = vst [vmem:[#allocation2 + $0x5] sm:$0x1] %v63_v15  ;;  %v67_v16 = vld [vmem:[%s66_s0] sm:$0x1]  ;;  %s70_s20 = scalar_lea.vmem [#allocation7], %s229_s14 }
  0x23   :  { %v106_v9 = vld [vmem:[#allocation2 + $0x8] sm:$0xff]  ;;  %68 = vst [vmem:[#allocation2 + $0x6] sm:$0x1] %v67_v16  ;;  %v71_v17 = vld [vmem:[%s70_s20] sm:$0x1] }
  0x24   :  { %v108_v11 = vmul.f32 %v106_v9, %v106_v9  ;;  %72 = vst [vmem:[#allocation2 + $0x7] sm:$0x1] %v71_v17 }
  0x26   :  { %111 = vadd.xlane.f32.xlu0 %v108_v11 }
  0x2b   :  { %v105_v18 = vld [vmem:[#allocation2] sm:$0xff] }
  0x2c   :  { %v107_v19 = vmul.f32 %v105_v18, %v105_v18 }
  0x2e   :  { %109 = vadd.xlane.f32.xlu0 %v107_v19 }
  0x99   :  { %v112_v20 = vpop.xlane.xlu0 %111 }
  0x9a   :  { %v114_v21 = vmax.f32 %v112_v20, 1e-24 }
  0x9c   :  { %243 = vrsqrt.f32 %v114_v21  ;;  %vm131_vm1 = vweird.f32 %v114_v21 }
  0xa1   :  { %v110_v26 = vpop.xlane.xlu0 %109 }
  0xa2   :  { %v244_v22 = vpop.eup %243  ;;  %v113_v27 = vmax.f32 %v110_v26, 1e-24 }
  0xa3   :  { %v126_v23 = vmul.f32 %v244_v22, %v114_v21  ;;  %vm132_vm0 = vweird.f32 %v244_v22 }
  0xa4   :  { %245 = vrsqrt.f32 %v113_v27  ;;  %vm133_vm2 = vmor %vm131_vm1, %vm132_vm0  ;;  %vm121_vm4 = vweird.f32 %v113_v27 }
  0xa5   :  { %v127_v24 = vmul.f32 %v244_v22, %v126_v23 }
  0xa7   :  { %v128_v25 = vmul.f32 0.5, %v127_v24 }
  0xa9   :  { %v129_v28 = vsub.f32 1.5, %v128_v25 }
  0xaa   :  { %v246_v33 = vpop.eup %245 }
  0xab   :  { %v130_v29 = vmul.f32 %v244_v22, %v129_v28  ;;  %v116_v35 = vmul.f32 %v246_v33, %v113_v27  ;;  %vm122_vm3 = vweird.f32 %v246_v33 }
  0xac   :  { %vm123_vm5 = vmor %vm121_vm4, %vm122_vm3 }
  0xad   :  { %v134_v30 = vsel %vm133_vm2, %v244_v22, %v130_v29  ;;  %v117_v36 = vmul.f32 %v246_v33, %v116_v35 }
  0xae   :  { %v138_v31 = vmul.f32 %v134_v30, %v134_v30  ;;  %v136_v32 = vmul.f32 %v134_v30, %v106_v9 }
  0xaf   :  { %v118_v37 = vmul.f32 0.5, %v117_v36 }
  0xb0   :  { %v140_v34 = vmul.f32 %v138_v31, %v112_v20  ;;  %157 = vmatpush.xpose.msra.mxu0 %v136_v32 }
  0xb1   :  { %v119_v38 = vsub.f32 1.5, %v118_v37 }
  0xb3   :  { %v120_v39 = vmul.f32 %v246_v33, %v119_v38 }
  0xb5   :  { %v124_v40 = vsel %vm123_vm5, %v246_v33, %v120_v39 }
  0xb6   :  { %v137_v41 = vmul.f32 %v124_v40, %v124_v40  ;;  %v135_v42 = vmul.f32 %v124_v40, %v105_v18 }
  0xb8   :  { %v139_v43 = vmul.f32 %v137_v41, %v110_v26  ;;  %158 = vmatmul.f32.vlgmr.msra.gmra.mxu0 %v135_v42  ;;  %v162_v44 = vmul.f32 %v136_v32, %v135_v42 }
  0xba   :  { %v141_v45 = vadd.f32 %v140_v34, %v139_v43  ;;  %163 = vadd.xlane.f32.xlu1 %v162_v44 }
  0xbc   :  { %v179_v58 = vmul.f32 0.02, %v141_v45 }
 0x12d   :  { %v164_v46 = vpop.xlane.xlu1 %163 }
 0x135   :  { %v159_v47 = vpop.f32.mrf.mxu0 }
 0x136   :  { %v165_v48 = vsub.f32 %v159_v47, %v164_v46 }
 0x138   :  { %v167_v49 = vsel %vm166_vm6, %v165_v48, -inf }
 0x139   :  { %168 = vmax.xlane.f32.xlu1 %v167_v49 }
 0x1ac   :  { %v169_v50 = vpop.xlane.xlu1 %168 }
 0x1ad   :  { %v170_v51 = vsub.f32 %v165_v48, %v169_v50 }
 0x1af   :  { %v171_v52 = vmul.f32 1.442695, %v170_v51 }
 0x1b1   :  { %247 = vpow2.f32 %v171_v52 }
 0x1b7   :  { %v248_v53 = vpop.eup %247 }
 0x1b8   :  { %v173_v54 = vsel %vm166_vm6, %v248_v53, 0.0 }
 0x1b9   :  { %174 = vadd.xlane.f32.xlu2 %v173_v54 }
 0x22c   :  { %v175_v55 = vpop.xlane.xlu2 %174 }
 0x22d   :  { %249 = vlog2.f32 %v175_v55 }
 0x233   :  { %v250_v56 = vpop.eup %249 }
 0x234   :  { %v177_v57 = vmul.f32 0.6931472, %v250_v56 }
 0x236   :  { %v178_v59 = vadd.f32 %v177_v57, %v169_v50 }
 0x238   :  { %v180_v60 = vadd.f32 %v179_v58, %v178_v59 }
 0x23a   :  { %v181_v61 = vrot.slane %v180_v60, 4 }
 0x23c   :  { %v182_v62 = vadd.f32 %v181_v61, %v180_v60 }
 0x23e   :  { %v183_v63 = vrot.slane %v182_v62, 2 }
 0x240   :  { %v184_v0 = vadd.f32 %v183_v63, %v182_v62 }
 0x242   :  { %v185_v1 = vrot.slane %v184_v0, 1 }
 0x244   :  { %v186_v2 = vadd.f32 %v185_v1, %v184_v0 }
 0x246   :  { %v187_v3 = vmul.f32 0.125, %v186_v2 }
 0x248   :  { %188 = vst [vmem:[#allocation8] sm:$0x1] %v187_v3 }
 0x249   :  { %199 = dma.vmem_to_hbm [thread:$0]  %s195_s22, 16, %s197_s24, [#allocation5]  }
 0x24a   :  { %315 = dma.done.wait [#allocation5], 16  }
 0x24b   :  { %316 = vsyncadd [#allocation5], 4294967280 }
 0x24c   :  { %204 = vsyncpa [#allocation4], 1 }
 0x24d   :  { %205 = vsyncpa [#allocation5], 1 }
 0x24e   :  { %206 = vsyncpa [#allocation6], 1 }

</bundles_post_ra>
